<compile_context>
chip_gen: v7x
topology: tpu7x:2x2x1
jax: 0.10.0
libtpu: 0.0.40
codegen_flags: <defaults>
</compile_context>

<pallas_src>
import functools

import jax
import jax.numpy as jnp
from jax import lax
from jax.experimental import pallas as pl
from jax.experimental.pallas import tpu as pltpu

_LANE = 128
_MIN_SPLIT_BYTES = 2 * 1024 * 1024   # only force a multi-program grid above this


def _cdiv(a, b):
    return -(-a // b)


def _round_up(a, m):
    return _cdiv(a, m) * m


def _i32_const(x):
    """Python int (possibly >= 2**31) -> wrapped int32 constant."""
    x &= 0xFFFFFFFF
    if x >= 1 << 31:
        x -= 1 << 32
    return jnp.int32(x)


def _dropout_bits(idx, seed):
    """Counter-based 32-bit hash (2-round splitmix-style mix).

    Pure int32 ops (wrapping mul / xor / logical shift) -> lowers on TPU and in
    interpret mode.  Depends only on (seed, element index), never on the grid
    decomposition, so the kernel can be checked exactly against a pure-JAX
    reference.
    """
    x = idx ^ (seed * _i32_const(0x9E3779B1))
    x = x * _i32_const(0x7FEB352D)
    x = x ^ lax.shift_right_logical(x, 15)
    x = x * _i32_const(0x846CA68B)
    x = x ^ lax.shift_right_logical(x, 16)
    return x


def _signed_threshold(p):
    """Signed int32 threshold t with P(uniform int32 >= t) == 1 - p.

    'keep <=> bits >= t' is then a plain signed compare: the usual
    flip-the-sign-bit-of-the-hash step is folded into the constant.
    """
    t = int(round(p * float(1 << 32))) - (1 << 31)
    return max(-(1 << 31), min(t, (1 << 31) - 1))


# ----------------------------------------------------------------------------
# Kernels
# ----------------------------------------------------------------------------

def _add_pe_kernel(x_ref, pe_ref, o_ref):
    # x_ref/o_ref: (Bt, Tr, L); pe_ref: (1, Tr, L), broadcast over the batch dim.
    x = x_ref[...]
    o_ref[...] = (x + pe_ref[...].astype(x.dtype)).astype(o_ref.dtype)


def _add_pe_dropout_kernel(seed_ref, x_ref, pe_ref, o_ref, *, p, rows,
                           row_tile, batch_tile):
    x = x_ref[...]
    y = x + pe_ref[...].astype(x.dtype)
    lane = y.shape[-1]

    # Global flat element index.  The block base is a scalar (scalar unit);
    # the per-element part is two iotas (+ a third only when batch_tile > 1).
    base = (pl.program_id(1) * (batch_tile * rows)
            + pl.program_id(0) * row_tile) * lane
    idx = (lax.broadcasted_iota(jnp.int32, y.shape, 1) * lane
           + lax.broadcasted_iota(jnp.int32, y.shape, 2)) + base
    if batch_tile > 1:
        idx = idx + lax.broadcasted_iota(jnp.int32, y.shape, 0) * (rows * lane)

    bits = _dropout_bits(idx, seed_ref[0])
    keep = bits >= jnp.int32(_signed_threshold(p))
    scale = jnp.asarray(1.0 / (1.0 - p), y.dtype)
    o_ref[...] = jnp.where(keep, y * scale, jnp.zeros_like(y)).astype(o_ref.dtype)


# ----------------------------------------------------------------------------
# Tiling helpers
# ----------------------------------------------------------------------------

def _target_block_bytes():
    """~8 MiB blocks on 128 MiB-VMEM parts (v5e/v6e), ~4 MiB on 64 MiB (v7x)."""
    vmem = None
    try:
        vmem = getattr(pltpu.get_tpu_info(), "vmem_capacity_bytes", None)
    except Exception:
        vmem = None
    if not vmem:
        return 4 * 1024 * 1024
    return 8 * 1024 * 1024 if vmem >= 96 * 1024 * 1024 else 4 * 1024 * 1024


def _pick_tiles(batch, rows, lane, itemsize, target_bytes):
    """Pick (row_tile, batch_tile, n_row_blocks, n_batch_blocks).

    * blocks capped near target_bytes; row_tile is a multiple of 8 or the full
      row extent (BlockSpec (8,128) rule)
    * cdiv grids on both axes (trailing partial blocks allowed)
    * guarantees >= 2 grid programs when there is > _MIN_SPLIT_BYTES of work
      so both v7x TensorCores are engaged.
    """
    row_bytes = lane * itemsize
    total_bytes = batch * rows * row_bytes

    cap_rows = max(8, target_bytes // row_bytes)
    if batch == 1 and total_bytes > _MIN_SPLIT_BYTES:
        cap_rows = min(cap_rows, max(8, _round_up(_cdiv(rows, 2), 8)))
    row_tile = rows if rows <= cap_rows else max(8, (cap_rows // 8) * 8)
    n_row_blocks = _cdiv(rows, row_tile)

    block_row_bytes = row_tile * row_bytes
    batch_tile = max(1, min(batch, target_bytes // max(1, block_row_bytes)))
    if n_row_blocks == 1 and batch >= 2 and total_bytes > _MIN_SPLIT_BYTES:
        batch_tile = min(batch_tile, max(1, batch // 2))
    n_batch_blocks = _cdiv(batch, batch_tile)
    return row_tile, batch_tile, n_row_blocks, n_batch_blocks


# ----------------------------------------------------------------------------
# Forward wrapper
# ----------------------------------------------------------------------------

def bert_embedding2_forward(sequence, pe, *, dropout_p=0.1, train=False, seed=0,
                            donate_sequence=False):
    """Pallas implementation of BERTEmbedding2.forward.

    sequence: (B, S, D) float array
    pe:       (1, max_len, D) learned positional-embedding parameter
    """
    B, S, D = sequence.shape
    _, max_len, d_pe = pe.shape
    if d_pe != D:
        raise ValueError(f"pe d_model {d_pe} != sequence d_model {D}")
    if S > max_len:
        raise ValueError(f"sequence length {S} exceeds positional-embedding max_len {max_len}")

    # --- lane-dense view ------------------------------------------------------
    lane = _LANE
    rows = _cdiv(S * D, lane)
    if (S * D) % lane == 0:
        x2 = sequence.reshape(B, rows, lane)
        if (max_len * D) % lane == 0:
            # Free contiguous reshape of the whole parameter; the BlockSpec
            # index_map selects only the first `rows` row blocks (no slice copy).
            pe2 = pe.reshape(1, (max_len * D) // lane, lane)
        else:
            pe2 = pe[:, :S, :].reshape(1, rows, lane)
    else:
        # Lane-sparse fallback: pad the flattened feature axis up to a multiple
        # of 128 so the kernel always issues full-lane (unmasked) stores.
        pad = rows * lane - S * D
        x2 = jnp.pad(sequence.reshape(B, S * D), ((0, 0), (0, pad))).reshape(B, rows, lane)
        pe2 = jnp.pad(pe[:, :S, :].reshape(1, S * D), ((0, 0), (0, pad))).reshape(1, rows, lane)
    # NOTE: pe2 is NOT cast here; the dtype cast happens on the VMEM tile inside
    # the kernel (free VPU op, no extra HBM pass over the parameter).

    # --- tiling ---------------------------------------------------------------
    itemsize = jnp.dtype(sequence.dtype).itemsize
    pe_itemsize = jnp.dtype(pe.dtype).itemsize
    target_bytes = _target_block_bytes()
    row_tile, batch_tile, n_row_blocks, n_batch_blocks = _pick_tiles(
        B, rows, lane, itemsize, target_bytes)
    if row_tile % 8 != 0 and pe2.shape[1] != row_tile:
        # Tiny/odd row counts: the block row dim must be a multiple of 8 or the
        # full array extent, so trim pe down to exactly the rows in use.
        pe2 = pe2[:, :row_tile, :]

    # Batch is the innermost grid axis and pe's block index ignores it, so the
    # pe tile stays VMEM-resident across batch steps (DMA'd once per row block).
    grid = (n_row_blocks, n_batch_blocks)
    x_spec = pl.BlockSpec((batch_tile, row_tile, lane), lambda r, b, *_: (b, r, 0))
    pe_spec = pl.BlockSpec((1, row_tile, lane), lambda r, b, *_: (0, r, 0))
    out_spec = pl.BlockSpec((batch_tile, row_tile, lane), lambda r, b, *_: (b, r, 0))
    out_shape = jax.ShapeDtypeStruct((B, rows, lane), sequence.dtype)

    # VMEM budget sized from the double-buffered working set (+ slack).
    x_block_bytes = batch_tile * row_tile * lane * itemsize
    pe_block_bytes = row_tile * lane * pe_itemsize
    vmem_limit = 2 * (2 * x_block_bytes + pe_block_bytes) + (4 << 20)
    vmem_limit = int(max(16 << 20, min(vmem_limit, 100 << 20)))
    compiler_params = pltpu.CompilerParams(
        dimension_semantics=("parallel", "parallel"),
        vmem_limit_bytes=vmem_limit,
    )

    n_elems = B * rows * lane
    apply_dropout = train and dropout_p > 0.0

    if not apply_dropout:
        # nn.Dropout is the identity in eval mode (and for p == 0).
        cost = pl.CostEstimate(
            flops=n_elems, transcendentals=0,
            bytes_accessed=2 * n_elems * itemsize + rows * lane * pe_itemsize)
        out = pl.pallas_call(
            _add_pe_kernel,
            out_shape=out_shape,
            grid_spec=pltpu.PrefetchScalarGridSpec(
                num_scalar_prefetch=0, grid=grid,
                in_specs=[x_spec, pe_spec], out_specs=out_spec),
            compiler_params=compiler_params,
            cost_estimate=cost,
            input_output_aliases={0: 0} if donate_sequence else {},
        )(x2, pe2)
    else:
        if not (0.0 <= dropout_p < 1.0):
            raise ValueError("dropout_p must be in [0, 1) for the training path")
        if n_elems >= 1 << 31:
            # TODO(synk): switch the dropout counter to two 32-bit words for
            # tensors with >= 2^31 elements.
            raise ValueError("dropout path requires B*S*D (padded) < 2**31")
        seed_arr = jnp.asarray([seed], dtype=jnp.int32)
        kernel = functools.partial(
            _add_pe_dropout_kernel, p=float(dropout_p), rows=rows,
            row_tile=row_tile, batch_tile=batch_tile)
        cost = pl.CostEstimate(
            flops=15 * n_elems,   # add + ~14 int32 ops for index/hash/mask
            transcendentals=0,
            bytes_accessed=2 * n_elems * itemsize + rows * lane * pe_itemsize)
        out = pl.pallas_call(
            kernel,
            out_shape=out_shape,
            grid_spec=pltpu.PrefetchScalarGridSpec(
                num_scalar_prefetch=1, grid=grid,
                in_specs=[x_spec, pe_spec], out_specs=out_spec),
            compiler_params=compiler_params,
            cost_estimate=cost,
            # x is operand 1 of the pallas_call (the prefetched seed is 0).
            input_output_aliases={1: 0} if donate_sequence else {},
        )(seed_arr, x2, pe2)

    if rows * lane == S * D:
        return out.reshape(B, S, D)
    return out.reshape(B, rows * lane)[:, : S * D].reshape(B, S, D)


# ----------------------------------------------------------------------------
# Pure-JAX reference (same math, same deterministic dropout hash)
# ----------------------------------------------------------------------------

def _reference_forward(sequence, pe, *, dropout_p=0.1, train=False, seed=0):
    B, S, D = sequence.shape
    y = sequence + pe[:, :S, :].astype(sequence.dtype)
    if not train or dropout_p == 0.0:
        return y
    rows = _cdiv(S * D, _LANE)                      # per-batch stride (padded)
    flat = jnp.arange(S * D, dtype=jnp.int32).reshape(1, S, D)
    bidx = jnp.arange(B, dtype=jnp.int32).reshape(B, 1, 1)
    idx = bidx * jnp.int32(rows * _LANE) + flat
    bits = _dropout_bits(idx, jnp.int32(seed))
    keep = bits >= jnp.int32(_signed_threshold(dropout_p))
    scale = jnp.asarray(1.0 / (1.0 - dropout_p), y.dtype)
    return jnp.where(keep, y * scale, jnp.zeros_like(y))


if __name__ == "__main__":
    # Small shapes consistent with the module: batch=2, seq=8, d_model=32.
    B, S, D, MAX_LEN = 2, 8, 32, 16
    key = jax.random.PRNGKey(0)
    k_x, k_pe = jax.random.split(key)

    sequence = jax.random.normal(k_x, (B, S, D), dtype=jnp.float32)
    # Learned positional embedding parameter (1, max_len, d_model).
    pe = 0.02 * jax.random.normal(k_pe, (1, MAX_LEN, D), dtype=jnp.float32)

    # Eval-mode forward (dropout == identity) — exact semantics check.
    out = jax.block_until_ready(bert_embedding2_forward(sequence, pe, train=False))
    ref = _reference_forward(sequence, pe, train=False)
    assert out.shape == (B, S, D)
    assert jnp.allclose(out, ref, atol=1e-6), "eval-mode mismatch vs reference"

    # Training-mode forward — deterministic, grid-invariant dropout mask, so it
    # is checked exactly against the pure-JAX reference.
    out_tr = jax.block_until_ready(
        bert_embedding2_forward(sequence, pe, dropout_p=0.1, train=True, seed=1234))
    ref_tr = _reference_forward(sequence, pe, dropout_p=0.1, train=True, seed=1234)
    assert out_tr.shape == (B, S, D)
    assert jnp.allclose(out_tr, ref_tr, atol=1e-6), "train-mode mismatch vs reference"

    # Lane-sparse shape (S*D not a multiple of 128) exercises the padded path.
    Ssp, Dsp = 5, 24
    seq_sp = jax.random.normal(k_x, (B, Ssp, Dsp), dtype=jnp.float32)
    pe_sp = 0.02 * jax.random.normal(k_pe, (1, MAX_LEN, Dsp), dtype=jnp.float32)
    out_sp = jax.block_until_ready(
        bert_embedding2_forward(seq_sp, pe_sp, dropout_p=0.1, train=True, seed=7))
    ref_sp = _reference_forward(seq_sp, pe_sp, dropout_p=0.1, train=True, seed=7)
    assert out_sp.shape == (B, Ssp, Dsp)
    assert jnp.allclose(out_sp, ref_sp, atol=1e-6), "lane-sparse mismatch vs reference"

    print("KERNEL_OK")
</pallas_src>

<mosaic_0001>
module attributes {stable_mosaic.version = 11 : i64} {
  func.func @_add_pe_kernel(%arg0: i32, %arg1: i32, %arg2: memref<2x2x128xf32, #tpu.memory_space<vmem>>, %arg3: memref<1x2x128xf32, #tpu.memory_space<vmem>>, %arg4: memref<2x2x128xf32, #tpu.memory_space<vmem>>) attributes {dimension_semantics = [#tpu.dimension_semantics<parallel>, #tpu.dimension_semantics<parallel>], iteration_bounds = array<i64: 1, 1>, scalar_prefetch = 0 : i64, scratch_operands = 0 : i64, tpu.core_type = #tpu.core_type<tc>, window_params = [{transform_indices = @transform_0, window_bounds = array<i64: 2, 2, 128>}, {transform_indices = @transform_1, window_bounds = array<i64: 1, 2, 128>}, {transform_indices = @transform_2, window_bounds = array<i64: 2, 2, 128>}]} {
    %c0 = arith.constant 0 : index
    %c0_0 = arith.constant 0 : index
    %c0_1 = arith.constant 0 : index
    %0 = vector.load %arg2[%c0, %c0_0, %c0_1] : memref<2x2x128xf32, #tpu.memory_space<vmem>>, vector<2x2x128xf32>
    %c0_2 = arith.constant 0 : index
    %c0_3 = arith.constant 0 : index
    %c0_4 = arith.constant 0 : index
    %1 = vector.load %arg3[%c0_2, %c0_3, %c0_4] : memref<1x2x128xf32, #tpu.memory_space<vmem>>, vector<1x2x128xf32>
    %2 = vector.broadcast %1 : vector<1x2x128xf32> to vector<2x2x128xf32>
    %3 = arith.addf %0, %2 : vector<2x2x128xf32>
    %c0_5 = arith.constant 0 : index
    %c0_6 = arith.constant 0 : index
    %c0_7 = arith.constant 0 : index
    %4 = vector.load %arg4[%c0_5, %c0_6, %c0_7] : memref<2x2x128xf32, #tpu.memory_space<vmem>>, vector<2x2x128xf32>
    tpu.vector_store %arg4[%c0_5, %c0_6, %c0_7], %3 {strides = array<i32>} : memref<2x2x128xf32, #tpu.memory_space<vmem>>, vector<2x2x128xf32>,
    return
  }
  func.func @transform_0(%arg0: i32, %arg1: i32) -> (i32, i32, i32) {
    %c0_i32 = arith.constant 0 : i32
    %c0_i32_0 = arith.constant 0 : i32
    return %arg1, %arg0, %c0_i32 : i32, i32, i32
  }
  func.func @transform_1(%arg0: i32, %arg1: i32) -> (i32, i32, i32) {
    %c0_i32 = arith.constant 0 : i32
    %c0_i32_0 = arith.constant 0 : i32
    %c0_i32_1 = arith.constant 0 : i32
    return %c0_i32, %arg0, %c0_i32_0 : i32, i32, i32
  }
  func.func @transform_2(%arg0: i32, %arg1: i32) -> (i32, i32, i32) {
    %c0_i32 = arith.constant 0 : i32
    %c0_i32_0 = arith.constant 0 : i32
    return %arg1, %arg0, %c0_i32 : i32, i32, i32
  }
}

</mosaic_0001>

<bundles_post_ra>
// kernel: tpu_custom_call.1
= control target key start
LH: loop header
LB: loop body
LE: loop exit
PB: predicated region body
PF: predicated region fallthrough
CT: control target
= control target key end

     0   :  { %7 = vsyncpa [#allocation3], 0  ;;  %s154_s0 = inlined_call_operand.hbm [shape: f32[2,2,128], index: 0, kind: input, shape index: {}]   ;;  %s155_s1 = inlined_call_operand.vmem [shape: f32[1,2,128], index: 1, kind: input, shape index: {}]   ;;  %s156_s2 = inlined_call_operand.hbm [shape: f32[2,2,128], index: 2, kind: output, shape index: {}]  }
   0x1   :  { %8 = vsyncpa [#allocation4], 0  ;;  %s102_s9 = smov [#allocation2]   ;;  %s54_s13 = scalar_lea.hbm %s154_s0, 64 }
   0x2   :  { %s14_s10 = sshll.u32 %s102_s9, 4  ;;  %p55_p0 = scmp.ne.s32.totalorder %s154_s0, %s54_s13  ;;  %s15_s10 = int_to_ptr.vmem [resolvable:$true] %s14_s10 }
   0x3   :  { %p58_p1 = scmp.lt.u32.totalorder %s54_s13, %s154_s0 }
   0x5   :  { %p60_p2 = pnand %p58_p1, %p55_p0 }
   0x7   :  { %63 = shalt.err (!%p60_p2)
}
   0x8   :  { %s64_s18 = scalar_lea.vmem %s15_s10, 64  ;;  %p69_p4 = scmp.lt.s32.totalorder %s15_s10, %s15_s10 }
   0x9   :  { %p65_p3 = scmp.ne.s32.totalorder %s15_s10, %s64_s18  ;;  %p70_p5 = scmp.lt.s32.totalorder %s64_s18, %s64_s18 }
   0xb   :  { %p71_p6 = por %p70_p5, %p69_p4 }
   0xd   :  { %p72_p7 = pnand %p71_p6, %p65_p3 }
   0xf   :  { %75 = shalt.err (!%p72_p7)
}
  0x10   :  { %s103_s19 = smov 32   ;;  %s104_s20 = smov 2  }
  0x11   :  { %20 = dma.hbm_to_vmem [thread:$0]  %s154_s0, 64, %s15_s10, [#allocation3], %s103_s19, %s103_s19, %s104_s20  }
  0x12   :  { %98 = dma.done.wait [#allocation3], 64  }
  0x13   :  { %99 = vsyncadd [#allocation3], 4294967232  ;;  %s105_s23 = smov [#allocation5]   ;;  %v26_v0 = vld [vmem:[#allocation2] sm:$0x3] }
  0x14   :  { %s38_s24 = sshll.u32 %s105_s23, 4  ;;  %v28_v1 = vld [vmem:[%s155_s1] sm:$0x3]  ;;  %v27_v2 = vld [vmem:[#allocation2 + $0x2] sm:$0x3]  ;;  %s39_s24 = int_to_ptr.vmem [resolvable:$true] %s38_s24 }
  0x15   :  { %v29_v3 = vadd.f32 %v28_v1, %v26_v0  ;;  %v30_v4 = vadd.f32 %v28_v1, %v27_v2  ;;  %s76_s27 = scalar_lea.vmem %s39_s24, 64  ;;  %p81_p9 = scmp.lt.s32.totalorder %s39_s24, %s39_s24 }
  0x16   :  { %p77_p8 = scmp.ne.s32.totalorder %s39_s24, %s76_s27  ;;  %p82_p10 = scmp.lt.s32.totalorder %s76_s27, %s76_s27 }
  0x17   :  { %31 = vst [vmem:[#allocation5] sm:$0x3] %v29_v3  ;;  %32 = vst [vmem:[#allocation5 + $0x2] sm:$0x3] %v30_v4 }
  0x18   :  { %p83_p11 = por %p82_p10, %p81_p9 }
  0x1a   :  { %p84_p12 = pnand %p83_p11, %p77_p8 }
  0x1c   :  { %87 = shalt.err (!%p84_p12)
}
  0x1d   :  { %s88_s29 = scalar_lea.hbm %s156_s2, 64 }
  0x1e   :  { %p89_p13 = scmp.ne.s32.totalorder %s156_s2, %s88_s29  ;;  %p92_p0 = scmp.lt.u32.totalorder %s88_s29, %s156_s2 }
  0x20   :  { %p94_p1 = pnand %p92_p0, %p89_p13 }
  0x22   :  { %97 = shalt.err (!%p94_p1)
}
  0x23   :  { %44 = dma.vmem_to_hbm [thread:$0]  %s39_s24, 64, %s156_s2, [#allocation4], %s103_s19, %s103_s19, %s104_s20  }
  0x24   :  { %100 = dma.done.wait [#allocation4], 64  }
  0x25   :  { %101 = vsyncadd [#allocation4], 4294967232 }
  0x26   :  { %48 = vsyncpa [#allocation3], 1 }
  0x27   :  { %49 = vsyncpa [#allocation4], 1 }

</bundles_post_ra>
